<compile_context>
chip_gen: v7x
topology: tpu7x:2x2x1
jax: 0.10.0
libtpu: 0.0.40
codegen_flags: <defaults>
</compile_context>

<pallas_src>
import functools

import jax
import jax.numpy as jnp
from jax.experimental import pallas as pl
from jax.experimental.pallas import tpu as pltpu


def _pair(v):
    if isinstance(v, (tuple, list)):
        assert len(v) == 2
        return tuple(v)
    return (v, v)


def _quadruple(v):
    if isinstance(v, (tuple, list)):
        assert len(v) == 4
        return tuple(v)
    return (v, v, v, v)


def _round_up(v, m):
    return (v + m - 1) // m * m


def _sort2(a, b):
    return jnp.minimum(a, b), jnp.maximum(a, b)


def _median9(p):
    """Smith/Paeth median-of-9 selection network (19 CEs), DCE-pruned.

    Exact lower-median of 9 values (all ops are VPU min/max)."""
    p = list(p)
    p[1], p[2] = _sort2(p[1], p[2])
    p[4], p[5] = _sort2(p[4], p[5])
    p[7], p[8] = _sort2(p[7], p[8])
    p[0], p[1] = _sort2(p[0], p[1])
    p[3], p[4] = _sort2(p[3], p[4])
    p[6], p[7] = _sort2(p[6], p[7])
    p[1], p[2] = _sort2(p[1], p[2])
    p[4], p[5] = _sort2(p[4], p[5])
    p[7], p[8] = _sort2(p[7], p[8])
    p[3] = jnp.maximum(p[0], p[3])      # PIX_SORT(0,3): only max live
    p[5] = jnp.minimum(p[5], p[8])      # PIX_SORT(5,8): only min live
    p[4], p[7] = _sort2(p[4], p[7])     # PIX_SORT(4,7): both live
    p[6] = jnp.maximum(p[3], p[6])      # PIX_SORT(3,6): only max live
    p[4] = jnp.maximum(p[1], p[4])      # PIX_SORT(1,4): only max live
    p[2] = jnp.minimum(p[2], p[5])      # PIX_SORT(2,5): only min live
    p[4] = jnp.minimum(p[4], p[7])      # PIX_SORT(4,7): only min live
    p[4], p[2] = _sort2(p[4], p[2])     # PIX_SORT(4,2): both live
    p[4] = jnp.maximum(p[6], p[4])      # PIX_SORT(6,4): only max live
    return jnp.minimum(p[4], p[2])      # PIX_SORT(4,2): only min live


def _median_network(wins):
    k = len(wins)
    if k == 1:
        return wins[0]
    if k == 9:
        return _median9(wins)
    # General fallback: compare-exchange full sort, lower median (k-1)//2
    # (matches torch.median semantics).
    p = list(wins)
    for i in range(k):
        for j in range(k - 1 - i):
            p[j], p[j + 1] = _sort2(p[j], p[j + 1])
    return p[(k - 1) // 2]


def _median_pool_kernel(x_ref, o_ref, *, kh, kw, th, wo_pad, nh, compute_dtype):
    # x_ref: (B, Hp_pad, Wp_pad) VMEM ; o_ref: (B, Ho_pad, Wo_pad) VMEM
    b = x_ref.shape[0]
    rows_in = th + kh - 1  # input rows needed for th dense output rows

    def do_chunk(h0):
        xs = x_ref[:, pl.ds(h0, rows_in), :].astype(compute_dtype)
        wins = []
        for dy in range(kh):
            for dx in range(kw):
                wins.append(
                    jax.lax.slice(xs, (0, dy, dx), (b, dy + th, dx + wo_pad))
                )
        med = _median_network(wins)
        o_ref[:, pl.ds(h0, th), :] = med.astype(o_ref.dtype)

    if nh <= 4:
        # Small plane: fully static unrolled chunks (no dynamic indexing).
        for i in range(nh):
            do_chunk(i * th)
    else:
        def body(i, carry):
            do_chunk(pl.multiple_of(i * th, th))
            return carry

        jax.lax.fori_loop(0, nh, body, 0)


def _choose_batch(nc, per_plane_bytes, budget_bytes=4 << 20):
    """Largest divisor of nc fitting the VMEM budget, keeping grid >= 2."""
    best = 1
    for d in range(1, nc + 1):
        if nc % d:
            continue
        if d * per_plane_bytes > budget_bytes:
            continue
        if nc // d >= 2 or nc == 1:
            best = d
    return best


def _compute_dtype_for(dtype):
    dtype = jnp.dtype(dtype)
    if dtype == jnp.dtype(jnp.bfloat16):
        try:
            kind = jax.devices()[0].device_kind.lower()
        except Exception:
            kind = ""
        # v5e and older have no bf16 VALU: upcast once instead of per-op.
        if any(t in kind for t in ("v2", "v3", "v4", "v5 lite", "v5e")):
            return jnp.dtype(jnp.float32)
    return dtype


class MedianPool2d:
    """Median pool / median filter. Matches the PyTorch module semantics."""

    def __init__(self, kernel_size=3, stride=1, padding=0, same=False):
        self.k = _pair(kernel_size)
        self.stride = _pair(stride)
        self.padding = _quadruple(padding)  # (l, r, t, b)
        self.same = same

    def _pad_amounts(self, x):
        if self.same:
            ih, iw = x.shape[2], x.shape[3]
            if ih % self.stride[0] == 0:
                ph = max(self.k[0] - self.stride[0], 0)
            else:
                ph = max(self.k[0] - ih % self.stride[0], 0)
            if iw % self.stride[1] == 0:
                pw = max(self.k[1] - self.stride[1], 0)
            else:
                pw = max(self.k[1] - iw % self.stride[1], 0)
            p_l = pw // 2
            p_r = pw - p_l
            p_t = ph // 2
            p_b = ph - p_t
            return (p_l, p_r, p_t, p_b)
        return self.padding

    def __call__(self, x):
        n, c, h, w = x.shape
        p_l, p_r, p_t, p_b = self._pad_amounts(x)
        kh, kw = self.k
        sh, sw = self.stride

        hp = h + p_t + p_b
        wp = w + p_l + p_r
        ho_dense = hp - kh + 1            # stride-1 (dense) output extents
        wo_dense = wp - kw + 1
        ho = (hp - kh) // sh + 1          # final strided output extents
        wo = (wp - kw) // sw + 1

        # Lane/sublane-aligned dense-output extents -> unmasked 128-wide stores.
        ho_pad = _round_up(ho_dense, 8)
        wo_pad = _round_up(wo_dense, 128)
        hp_pad = ho_pad + kh - 1
        wp_pad = wo_pad + kw - 1

        # Replicate padding + alignment padding in one pad (edge mode; the
        # alignment rows/cols only feed outputs we slice off).
        # TODO(synk): fuse the replicate padding into the kernel (clamped
        # window reads) to avoid materializing a second copy of x in HBM.
        xp = jnp.pad(
            x,
            ((0, 0), (0, 0),
             (p_t, p_b + (hp_pad - hp)),
             (p_l, p_r + (wp_pad - wp))),
            mode="edge",
        )

        nc = n * c
        xp_flat = xp.reshape(nc, hp_pad, wp_pad)

        itemsize = jnp.dtype(x.dtype).itemsize
        per_plane = (hp_pad * wp_pad + ho_pad * wo_pad) * itemsize
        bsz = _choose_batch(nc, per_plane)
        grid = nc // bsz

        th = 8  # output rows per in-kernel chunk (ho_pad is a multiple of 8)
        nh = ho_pad // th
        compute_dtype = _compute_dtype_for(x.dtype)

        kernel = functools.partial(
            _median_pool_kernel,
            kh=kh, kw=kw, th=th, wo_pad=wo_pad, nh=nh,
            compute_dtype=compute_dtype,
        )

        out_dense = pl.pallas_call(
            kernel,
            out_shape=jax.ShapeDtypeStruct((nc, ho_pad, wo_pad), x.dtype),
            grid_spec=pltpu.PrefetchScalarGridSpec(
                num_scalar_prefetch=0,
                grid=(grid,),
                in_specs=[pl.BlockSpec((bsz, hp_pad, wp_pad),
                                       lambda i: (i, 0, 0))],
                out_specs=pl.BlockSpec((bsz, ho_pad, wo_pad),
                                       lambda i: (i, 0, 0)),
            ),
            compiler_params=pltpu.CompilerParams(
                dimension_semantics=("parallel",)
            ),
        )(xp_flat)

        # Apply stride + crop alignment padding in the wrapper (keeps the
        # kernel free of lane-strided slices).
        out = out_dense[:, : (ho - 1) * sh + 1 : sh, : (wo - 1) * sw + 1 : sw]
        return out.reshape(n, c, ho, wo)


def _reference_median_pool(x, k, stride, padding, same):
    """Pure-JAX reference (sort-based) for correctness checking."""
    mod = MedianPool2d(k, stride, padding, same)
    p_l, p_r, p_t, p_b = mod._pad_amounts(x)
    xp = jnp.pad(x, ((0, 0), (0, 0), (p_t, p_b), (p_l, p_r)), mode="edge")
    kh, kw = mod.k
    sh, sw = mod.stride
    hp, wp = xp.shape[2], xp.shape[3]
    ho = (hp - kh) // sh + 1
    wo = (wp - kw) // sw + 1
    wins = []
    for dy in range(kh):
        for dx in range(kw):
            wins.append(
                xp[:, :, dy : dy + (ho - 1) * sh + 1 : sh,
                       dx : dx + (wo - 1) * sw + 1 : sw]
            )
    stacked = jnp.stack(wins, axis=-1)
    return jnp.sort(stacked, axis=-1)[..., (kh * kw - 1) // 2]


if __name__ == "__main__":
    key = jax.random.PRNGKey(0)
    x = jax.random.normal(key, (2, 4, 16, 16), dtype=jnp.float32)

    # Default module config: kernel_size=3, stride=1, padding=0, same=False
    pool = MedianPool2d(kernel_size=3, stride=1, padding=0, same=False)
    out = pool(x)
    out = jax.block_until_ready(out)

    ref = _reference_median_pool(x, 3, 1, 0, False)
    assert out.shape == (2, 4, 14, 14), out.shape
    assert jnp.allclose(out, ref, atol=0.0, rtol=0.0), "mismatch vs reference"

    print("KERNEL_OK")
</pallas_src>

<mosaic_0001>
module attributes {stable_mosaic.version = 11 : i64} {
  func.func @_median_pool_kernel(%arg0: i32, %arg1: memref<4x18x130xf32, #tpu.memory_space<vmem>>, %arg2: memref<4x16x128xf32, #tpu.memory_space<vmem>>) attributes {dimension_semantics = [#tpu.dimension_semantics<parallel>], iteration_bounds = array<i64: 2>, scalar_prefetch = 0 : i64, scratch_operands = 0 : i64, tpu.core_type = #tpu.core_type<tc>, window_params = [{transform_indices = @transform_0, window_bounds = array<i64: 4, 18, 130>}, {transform_indices = @transform_1, window_bounds = array<i64: 4, 16, 128>}]} {
    %c0 = arith.constant 0 : index
    %c0_0 = arith.constant 0 : index
    %c0_1 = arith.constant 0 : index
    %0 = vector.load %arg1[%c0, %c0_0, %c0_1] : memref<4x18x130xf32, #tpu.memory_space<vmem>>, vector<4x10x130xf32>
    %1 = vector.extract_strided_slice %0 {offsets = [0, 0, 0], sizes = [4, 8, 128], strides = [1, 1, 1]} : vector<4x10x130xf32> to vector<4x8x128xf32>
    %2 = vector.extract_strided_slice %0 {offsets = [0, 0, 1], sizes = [4, 8, 128], strides = [1, 1, 1]} : vector<4x10x130xf32> to vector<4x8x128xf32>
    %3 = vector.extract_strided_slice %0 {offsets = [0, 0, 2], sizes = [4, 8, 128], strides = [1, 1, 1]} : vector<4x10x130xf32> to vector<4x8x128xf32>
    %4 = vector.extract_strided_slice %0 {offsets = [0, 1, 0], sizes = [4, 8, 128], strides = [1, 1, 1]} : vector<4x10x130xf32> to vector<4x8x128xf32>
    %5 = vector.extract_strided_slice %0 {offsets = [0, 1, 1], sizes = [4, 8, 128], strides = [1, 1, 1]} : vector<4x10x130xf32> to vector<4x8x128xf32>
    %6 = vector.extract_strided_slice %0 {offsets = [0, 1, 2], sizes = [4, 8, 128], strides = [1, 1, 1]} : vector<4x10x130xf32> to vector<4x8x128xf32>
    %7 = vector.extract_strided_slice %0 {offsets = [0, 2, 0], sizes = [4, 8, 128], strides = [1, 1, 1]} : vector<4x10x130xf32> to vector<4x8x128xf32>
    %8 = vector.extract_strided_slice %0 {offsets = [0, 2, 1], sizes = [4, 8, 128], strides = [1, 1, 1]} : vector<4x10x130xf32> to vector<4x8x128xf32>
    %9 = vector.extract_strided_slice %0 {offsets = [0, 2, 2], sizes = [4, 8, 128], strides = [1, 1, 1]} : vector<4x10x130xf32> to vector<4x8x128xf32>
    %10 = arith.minimumf %2, %3 : vector<4x8x128xf32>
    %11 = arith.maximumf %2, %3 : vector<4x8x128xf32>
    %12 = arith.minimumf %5, %6 : vector<4x8x128xf32>
    %13 = arith.maximumf %5, %6 : vector<4x8x128xf32>
    %14 = arith.minimumf %8, %9 : vector<4x8x128xf32>
    %15 = arith.maximumf %8, %9 : vector<4x8x128xf32>
    %16 = arith.minimumf %1, %10 : vector<4x8x128xf32>
    %17 = arith.maximumf %1, %10 : vector<4x8x128xf32>
    %18 = arith.minimumf %4, %12 : vector<4x8x128xf32>
    %19 = arith.maximumf %4, %12 : vector<4x8x128xf32>
    %20 = arith.minimumf %7, %14 : vector<4x8x128xf32>
    %21 = arith.maximumf %7, %14 : vector<4x8x128xf32>
    %22 = arith.minimumf %17, %11 : vector<4x8x128xf32>
    %23 = arith.maximumf %17, %11 : vector<4x8x128xf32>
    %24 = arith.minimumf %19, %13 : vector<4x8x128xf32>
    %25 = arith.maximumf %19, %13 : vector<4x8x128xf32>
    %26 = arith.minimumf %21, %15 : vector<4x8x128xf32>
    %27 = arith.maximumf %21, %15 : vector<4x8x128xf32>
    %28 = arith.maximumf %16, %18 : vector<4x8x128xf32>
    %29 = arith.minimumf %25, %27 : vector<4x8x128xf32>
    %30 = arith.minimumf %24, %26 : vector<4x8x128xf32>
    %31 = arith.maximumf %24, %26 : vector<4x8x128xf32>
    %32 = arith.maximumf %28, %20 : vector<4x8x128xf32>
    %33 = arith.maximumf %22, %30 : vector<4x8x128xf32>
    %34 = arith.minimumf %23, %29 : vector<4x8x128xf32>
    %35 = arith.minimumf %33, %31 : vector<4x8x128xf32>
    %36 = arith.minimumf %35, %34 : vector<4x8x128xf32>
    %37 = arith.maximumf %35, %34 : vector<4x8x128xf32>
    %38 = arith.maximumf %32, %36 : vector<4x8x128xf32>
    %39 = arith.minimumf %38, %37 : vector<4x8x128xf32>
    %c0_2 = arith.constant 0 : index
    %c0_3 = arith.constant 0 : index
    %c0_4 = arith.constant 0 : index
    %40 = vector.load %arg2[%c0_2, %c0_3, %c0_4] : memref<4x16x128xf32, #tpu.memory_space<vmem>>, vector<4x8x128xf32>
    tpu.vector_store %arg2[%c0_2, %c0_3, %c0_4], %39 {strides = array<i32>} : memref<4x16x128xf32, #tpu.memory_space<vmem>>, vector<4x8x128xf32>,
    %c0_5 = arith.constant 0 : index
    %c8 = arith.constant 8 : index
    %c0_6 = arith.constant 0 : index
    %41 = vector.load %arg1[%c0_5, %c8, %c0_6] : memref<4x18x130xf32, #tpu.memory_space<vmem>>, vector<4x10x130xf32>
    %42 = vector.extract_strided_slice %41 {offsets = [0, 0, 0], sizes = [4, 8, 128], strides = [1, 1, 1]} : vector<4x10x130xf32> to vector<4x8x128xf32>
    %43 = vector.extract_strided_slice %41 {offsets = [0, 0, 1], sizes = [4, 8, 128], strides = [1, 1, 1]} : vector<4x10x130xf32> to vector<4x8x128xf32>
    %44 = vector.extract_strided_slice %41 {offsets = [0, 0, 2], sizes = [4, 8, 128], strides = [1, 1, 1]} : vector<4x10x130xf32> to vector<4x8x128xf32>
    %45 = vector.extract_strided_slice %41 {offsets = [0, 1, 0], sizes = [4, 8, 128], strides = [1, 1, 1]} : vector<4x10x130xf32> to vector<4x8x128xf32>
    %46 = vector.extract_strided_slice %41 {offsets = [0, 1, 1], sizes = [4, 8, 128], strides = [1, 1, 1]} : vector<4x10x130xf32> to vector<4x8x128xf32>
    %47 = vector.extract_strided_slice %41 {offsets = [0, 1, 2], sizes = [4, 8, 128], strides = [1, 1, 1]} : vector<4x10x130xf32> to vector<4x8x128xf32>
    %48 = vector.extract_strided_slice %41 {offsets = [0, 2, 0], sizes = [4, 8, 128], strides = [1, 1, 1]} : vector<4x10x130xf32> to vector<4x8x128xf32>
    %49 = vector.extract_strided_slice %41 {offsets = [0, 2, 1], sizes = [4, 8, 128], strides = [1, 1, 1]} : vector<4x10x130xf32> to vector<4x8x128xf32>
    %50 = vector.extract_strided_slice %41 {offsets = [0, 2, 2], sizes = [4, 8, 128], strides = [1, 1, 1]} : vector<4x10x130xf32> to vector<4x8x128xf32>
    %51 = arith.minimumf %43, %44 : vector<4x8x128xf32>
    %52 = arith.maximumf %43, %44 : vector<4x8x128xf32>
    %53 = arith.minimumf %46, %47 : vector<4x8x128xf32>
    %54 = arith.maximumf %46, %47 : vector<4x8x128xf32>
    %55 = arith.minimumf %49, %50 : vector<4x8x128xf32>
    %56 = arith.maximumf %49, %50 : vector<4x8x128xf32>
    %57 = arith.minimumf %42, %51 : vector<4x8x128xf32>
    %58 = arith.maximumf %42, %51 : vector<4x8x128xf32>
    %59 = arith.minimumf %45, %53 : vector<4x8x128xf32>
    %60 = arith.maximumf %45, %53 : vector<4x8x128xf32>
    %61 = arith.minimumf %48, %55 : vector<4x8x128xf32>
    %62 = arith.maximumf %48, %55 : vector<4x8x128xf32>
    %63 = arith.minimumf %58, %52 : vector<4x8x128xf32>
    %64 = arith.maximumf %58, %52 : vector<4x8x128xf32>
    %65 = arith.minimumf %60, %54 : vector<4x8x128xf32>
    %66 = arith.maximumf %60, %54 : vector<4x8x128xf32>
    %67 = arith.minimumf %62, %56 : vector<4x8x128xf32>
    %68 = arith.maximumf %62, %56 : vector<4x8x128xf32>
    %69 = arith.maximumf %57, %59 : vector<4x8x128xf32>
    %70 = arith.minimumf %66, %68 : vector<4x8x128xf32>
    %71 = arith.minimumf %65, %67 : vector<4x8x128xf32>
    %72 = arith.maximumf %65, %67 : vector<4x8x128xf32>
    %73 = arith.maximumf %69, %61 : vector<4x8x128xf32>
    %74 = arith.maximumf %63, %71 : vector<4x8x128xf32>
    %75 = arith.minimumf %64, %70 : vector<4x8x128xf32>
    %76 = arith.minimumf %74, %72 : vector<4x8x128xf32>
    %77 = arith.minimumf %76, %75 : vector<4x8x128xf32>
    %78 = arith.maximumf %76, %75 : vector<4x8x128xf32>
    %79 = arith.maximumf %73, %77 : vector<4x8x128xf32>
    %80 = arith.minimumf %79, %78 : vector<4x8x128xf32>
    %c0_7 = arith.constant 0 : index
    %c8_8 = arith.constant 8 : index
    %c0_9 = arith.constant 0 : index
    %81 = vector.load %arg2[%c0_7, %c8_8, %c0_9] : memref<4x16x128xf32, #tpu.memory_space<vmem>>, vector<4x8x128xf32>
    tpu.vector_store %arg2[%c0_7, %c8_8, %c0_9], %80 {strides = array<i32>} : memref<4x16x128xf32, #tpu.memory_space<vmem>>, vector<4x8x128xf32>,
    return
  }
  func.func @transform_0(%arg0: i32) -> (i32, i32, i32) {
    %c0_i32 = arith.constant 0 : i32
    %c0_i32_0 = arith.constant 0 : i32
    %c0_i32_1 = arith.constant 0 : i32
    return %arg0, %c0_i32, %c0_i32_0 : i32, i32, i32
  }
  func.func @transform_1(%arg0: i32) -> (i32, i32, i32) {
    %c0_i32 = arith.constant 0 : i32
    %c0_i32_0 = arith.constant 0 : i32
    %c0_i32_1 = arith.constant 0 : i32
    return %arg0, %c0_i32, %c0_i32_0 : i32, i32, i32
  }
}

</mosaic_0001>

<bundles_post_ra>
// kernel: tpu_custom_call.1
= control target key start
LH: loop header
LB: loop body
LE: loop exit
PB: predicated region body
PF: predicated region fallthrough
CT: control target
= control target key end

     0   :  { %6 = vsyncpa [#allocation3], 0  ;;  %s2322_s0 = inlined_call_operand.vmem [shape: f32[8,18,130], index: 0, kind: input, shape index: {}]   ;;  %s2323_s1 = inlined_call_operand.hbm [shape: f32[8,16,128], index: 1, kind: output, shape index: {}]  }
   0x1   :  { %8 = vsyncpa [#allocation3 + $0x1], 0  ;;  %s1361_s6 = smov 0   ;;  %s1363_s7 = smov 0  }
   0x2   :  { %s1365_s8 = smov 0   ;;  %s1367_s9 = smov 0  }
   0x3 LB: > { %s1382_s10 = sadd.s32 4294967295, %s1345_s9   ;;  %s1225_s11 = sadd.s32 4294967294, %s1345_s9   ;;  %s1345_s9 = sphi %s1367_s9, %s2336_s9   ;;  %s1341_s8 = sphi %s1365_s8, %s2335_s8   ;;  %s1337_s7 = sphi %s1363_s7, %s2334_s7   ;;  %s1333_s6 = sphi %s1361_s6, %s2333_s6  }
   0x4   : > { %s1386_s12 = sadd.s32 1, %s1345_s9   ;;  %s47_s13 = sadd.s32 1, %s1341_s8 }
   0x5   : > { %s44_s14 = ssub.s32 %s1345_s9, %s1386_s12  ;;  %p57_p0 = scmp.ne.s32.totalorder %s1341_s8, %s1337_s7 }
   0x6   : > { %p45_p1 = scmp.eq.s32.totalorder %s44_s14, 0  ;;  %p58_p2 = scmp.eq.s32.totalorder %s1382_s10, 1 }
   0x7   : > { %p63_p3 = scmp.ne.s32.totalorder %s1337_s7, %s1333_s6  ;;  %p64_p4 = scmp.eq.s32.totalorder %s1225_s11, 1 }
   0x8   : > { %s1397_s15 = scalar_select %p45_p1, %s1341_s8, %s47_s13  }
   0x9   : > { %p1399_p5 = por %p58_p2, %p57_p0  ;;  %p1403_p6 = por %p64_p4, %p63_p3 }
   0xa   : > { %p1228_p7 = scmp.ge.s32.totalorder %s1345_s9, 1  ;;  %p92_p8 = scmp.lt.s32.totalorder %s1345_s9, 3 }
   0xc   : > { %p93_p9 = pnand %p1228_p7, %p92_p8 }
   0xe   : > { %96 = sbr.rel (%p93_p9) target bundleno = 467 (0x1d3), region = 24 }
  0x15   : > { %s1230_s18 = sshll.u32 %s1382_s10, 2  ;;  %s1347_s23 = smov 127   ;;  %vm161_vm0 = vcmask 1039360   ;;  %vm410_vm1 = vcmask 1046528   ;;  %vm511_vm2 = vcmask 1045504  }
  0x16   : > { %p114_p10 = scmp.lt.s32.totalorder %s1230_s18, 7  ;;  %s110_s24 = sand.u32 1, %s1337_s7  }
  0x17   : > { %s1229_s25 = sshll.u32 %s110_s24, 6  ;;  %s1239_s27 = sshll.u32 %s1382_s10, 10 }
  0x18   : > { %s2338_s18 = smov (!%p114_p10, %s1230_s18), 7  ;;  %s2123_s26 = scalar_lea.vmem [#allocation2], %s1229_s25 }
  0x19   : > { %s1240_s19 = smul.u32 48, %s2338_s18  ;;  %s1163_s28 = sshll.u32 %s2123_s26, 4  ;;  %s2276_s28 = int_to_ptr.vmem [resolvable:$true] %s1163_s28 }
  0x1a   : > { %s2274_s2 = scalar_lea.hbm %s2323_s1, %s1239_s27  ;;  %s2281_s3 = scalar_lea.sflag [#allocation3], %s110_s24 }
  0x1b   : > { %s1413_s22 = scalar_lea.vmem %s2322_s0, %s1240_s19  ;;  %s1283_s4 = scalar_lea.vmem %s2276_s28, 1024 }
  0x1c   : > { %v1416_v0 = vld [vmem:[%s1413_s22 + $0x30] sm:$0xff]  ;;  %v1419_v1 = vld [vmem:[%s1413_s22] sm:$0xff]  ;;  %v1426_v2 = vld [vmem:[%s1413_s22 + $0x38] sm:$0xff]  ;;  %p1284_p11 = scmp.ne.s32.totalorder %s2276_s28, %s1283_s4  ;;  %s1348_s5 = smov [#allocation2]  }
  0x1d   : > { %149 = vrot.lane.b32.xlu1 %v1416_v0, %s1347_s23  ;;  %145 = vrot.lane.b32.xlu0 %v1419_v1, %s1347_s23  ;;  %v1429_v3 = vld [vmem:[%s1413_s22 + $0x8] sm:$0xff]  ;;  %v1439_v5 = vld [vmem:[%s1413_s22 + $0x60] sm:$0xff]  ;;  %s1287_s10 = sshll.u32 %s1348_s5, 4  ;;  %s1288_s10 = int_to_ptr.vmem [resolvable:$false] %s1287_s10 }
  0x1e   : > { %v1436_v4 = vld [vmem:[%s1413_s22 + $0x68] sm:$0xff]  ;;  %v1446_v6 = vld [vmem:[%s1413_s22 + $0x98] sm:$0xff]  ;;  %v1449_v7 = vld [vmem:[%s1413_s22 + $0x90] sm:$0xff]  ;;  %p1285_p12 = pnand %p1284_p11, %p1399_p5  ;;  %s1289_s11 = scalar_lea.vmem %s1288_s10, 2048 }
  0x1f   : > { %v1456_v8 = vld [vmem:[%s1413_s22 + $0x18] sm:$0x3]  ;;  %v1459_v9 = vld [vmem:[%s1413_s22 + $0x10] sm:$0x3]  ;;  %v1466_v10 = vld [vmem:[%s1413_s22 + $0x48] sm:$0x3]  ;;  %p1290_p0 = scmp.lt.s32.totalorder %s2276_s28, %s1288_s10  ;;  %p1291_p1 = scmp.lt.s32.totalorder %s1289_s11, %s1283_s4 }
  0x20   : > { %v1469_v11 = vld [vmem:[%s1413_s22 + $0x40] sm:$0x3]  ;;  %v1476_v12 = vld [vmem:[%s1413_s22 + $0x78] sm:$0x3]  ;;  %v1479_v13 = vld [vmem:[%s1413_s22 + $0x70] sm:$0x3]  ;;  %p1286_p13 = pneg %p1285_p12 }
  0x21   : > { %151 = vrot.lane.b32.xlu1 %v1426_v2, %s1347_s23  ;;  %147 = vrot.lane.b32.xlu0 %v1429_v3, %s1347_s23  ;;  %v1486_v14 = vld [vmem:[%s1413_s22 + $0xa8] sm:$0x3]  ;;  %v1489_v15 = vld [vmem:[%s1413_s22 + $0xa0] sm:$0x3]  ;;  %p1292_p2 = por %p1291_p1, %p1290_p0 }
  0x22   : > { %v1496_v16 = vld [vmem:[%s1413_s22 + $0x10] sm:$0xff]  ;;  %v1499_v17 = vld [vmem:[%s1413_s22 + $0x18] sm:$0xff]  ;;  %v1506_v18 = vld [vmem:[%s1413_s22 + $0x40] sm:$0xff] }
  0x23   : > { %v1509_v19 = vld [vmem:[%s1413_s22 + $0x48] sm:$0xff]  ;;  %v1516_v20 = vld [vmem:[%s1413_s22 + $0x70] sm:$0xff]  ;;  %v1519_v21 = vld [vmem:[%s1413_s22 + $0x78] sm:$0xff]  ;;  %p1293_p3 = pnand %p1292_p2, %p1286_p13 }
  0x24   : > { %v1526_v22 = vld [vmem:[%s1413_s22 + $0xa0] sm:$0xff]  ;;  %v1529_v23 = vld [vmem:[%s1413_s22 + $0xa8] sm:$0xff]  ;;  %v1546_v26 = vld [vmem:[%s1413_s22 + $0x50] sm:$0x3] }
  0x25   : > { %155 = vrot.lane.b32.xlu1 %v1436_v4, %s1347_s23  ;;  %153 = vrot.lane.b32.xlu0 %v1439_v5, %s1347_s23  ;;  %v1536_v24 = vld [vmem:[%s1413_s22 + $0x20] sm:$0x3]  ;;  %v1539_v25 = vld [vmem:[%s1413_s22 + $0x28] sm:$0x3] }
  0x26   : > { %2328 = vst [vmem:[#allocation5_spill] sm:$0xff] %v1536_v24  ;;  %v1549_v27 = vld [vmem:[%s1413_s22 + $0x58] sm:$0x3]  ;;  %v1556_v28 = vld [vmem:[%s1413_s22 + $0x80] sm:$0x3] }
  0x27   : > { %v1559_v29 = vld [vmem:[%s1413_s22 + $0x88] sm:$0x3]  ;;  %v1566_v30 = vld [vmem:[%s1413_s22 + $0xb0] sm:$0x3]  ;;  %v1569_v31 = vld [vmem:[%s1413_s22 + $0xb8] sm:$0x3] }
  0x29   : > { %159 = vrot.lane.b32.xlu1 %v1446_v6, %s1347_s23  ;;  %157 = vrot.lane.b32.xlu0 %v1449_v7, %s1347_s23 }
  0x2d   : > { %200 = vrot.lane.b32.xlu1 %v1456_v8, %s1347_s23  ;;  %198 = vrot.lane.b32.xlu0 %v1459_v9, %s1347_s23 }
  0x31   : > { %204 = vrot.lane.b32.xlu1 %v1466_v10, %s1347_s23  ;;  %202 = vrot.lane.b32.xlu0 %v1469_v11, %s1347_s23 }
  0x35   : > { %208 = vrot.lane.b32.xlu1 %v1476_v12, %s1347_s23  ;;  %206 = vrot.lane.b32.xlu0 %v1479_v13, %s1347_s23 }
  0x39   : > { %212 = vrot.lane.b32.xlu1 %v1486_v14, %s1347_s23  ;;  %210 = vrot.lane.b32.xlu0 %v1489_v15, %s1347_s23 }
  0x3d   : > { %660 = vrot.lane.b32.xlu1 %v1496_v16, %s1347_s23  ;;  %662 = vrot.lane.b32.xlu0 %v1499_v17, %s1347_s23 }
  0x41   : > { %664 = vrot.lane.b32.xlu1 %v1506_v18, %s1347_s23  ;;  %666 = vrot.lane.b32.xlu0 %v1509_v19, %s1347_s23 }
  0x45   : > { %668 = vrot.lane.b32.xlu1 %v1516_v20, %s1347_s23  ;;  %670 = vrot.lane.b32.xlu0 %v1519_v21, %s1347_s23 }
  0x49   : > { %672 = vrot.lane.b32.xlu1 %v1526_v22, %s1347_s23  ;;  %674 = vrot.lane.b32.xlu0 %v1529_v23, %s1347_s23 }
  0x4d   : > { %712 = vrot.lane.b32.xlu1 %v1536_v24, %s1347_s23  ;;  %714 = vrot.lane.b32.xlu0 %v1539_v25, %s1347_s23 }
  0x51   : > { %716 = vrot.lane.b32.xlu1 %v1546_v26, %s1347_s23  ;;  %718 = vrot.lane.b32.xlu0 %v1549_v27, %s1347_s23 }
  0x55   : > { %720 = vrot.lane.b32.xlu1 %v1556_v28, %s1347_s23  ;;  %722 = vrot.lane.b32.xlu0 %v1559_v29, %s1347_s23 }
  0x59   : > { %724 = vrot.lane.b32.xlu1 %v1566_v30, %s1347_s23  ;;  %726 = vrot.lane.b32.xlu0 %v1569_v31, %s1347_s23 }
  0x8f   : > { %v150_v32 = vpop.permute.xlu1 %149  ;;  %v146_v33 = vpop.permute.xlu0 %145 }
  0x93   : > { %v152_v34 = vpop.permute.xlu1 %151  ;;  %v148_v35 = vpop.permute.xlu0 %147 }
  0x94   : > { %v175_v36 = vmin.f32 %v1429_v3, %v148_v35  ;;  %v177_v37 = vmin.f32 %v1426_v2, %v152_v34  ;;  %v183_v62 = vmax.f32 %v1429_v3, %v148_v35 }
  0x96   : > { %252 = vrot.lane.b32.xlu1 %v175_v36, %s1347_s23 }
  0x97   : > { %v156_v38 = vpop.permute.xlu1 %155  ;;  %v154_v39 = vpop.permute.xlu0 %153 }
  0x98   : > { %v179_v40 = vmin.f32 %v1436_v4, %v156_v38 }
  0x9a   : > { %256 = vrot.lane.b32.xlu1 %v177_v37, %s1347_s23  ;;  %v185_v37 = vmax.f32 %v1426_v2, %v152_v34 }
  0x9b   : > { %v1580_v41 = vpop.permute.xlu1 %159  ;;  %v158_v42 = vpop.permute.xlu0 %157 }
  0x9c   : > { %v181_v43 = vmin.f32 %v1446_v6, %v1580_v41 }
  0x9e   : > { %260 = vrot.lane.b32.xlu1 %v179_v40, %s1347_s23 }
  0x9f   : > { %v1585_v44 = vpop.permute.xlu1 %200  ;;  %v1587_v45 = vpop.permute.xlu0 %198 }
  0xa0   : > { %v227_v46 = vmin.f32 %v1456_v8, %v1585_v44 }
  0xa2   : > { %264 = vrot.lane.b32.xlu1 %v181_v43, %s1347_s23 }
  0xa3   : > { %v1592_v47 = vpop.permute.xlu1 %204  ;;  %v1594_v48 = vpop.permute.xlu0 %202 }
  0xa4   : > { %v229_v49 = vmin.f32 %v1466_v10, %v1592_v47 }
  0xa6   : > { %292 = vrot.lane.b32.xlu1 %v227_v46, %s1347_s23  ;;  %v162_v46 = vsel %vm161_vm0, %v146_v33, %v148_v35 }
  0xa7   : > { %v1599_v50 = vpop.permute.xlu1 %208  ;;  %v1601_v51 = vpop.permute.xlu0 %206 }
  0xa8   : > { %v231_v52 = vmin.f32 %v1476_v12, %v1599_v50 }
  0xaa   : > { %296 = vrot.lane.b32.xlu1 %v229_v49, %s1347_s23  ;;  %v187_v49 = vmax.f32 %v1436_v4, %v156_v38 }
  0xab   : > { %v1606_v53 = vpop.permute.xlu1 %212  ;;  %v1608_v54 = vpop.permute.xlu0 %210 }
  0xac   : > { %v233_v55 = vmin.f32 %v1486_v14, %v1606_v53 }
  0xae   : > { %300 = vrot.lane.b32.xlu1 %v231_v52, %s1347_s23 }
  0xaf   : > { %v661_v56 = vpop.permute.xlu1 %660  ;;  %v1613_v57 = vpop.permute.xlu0 %662 }
  0xb0   : > { %v689_v58 = vmin.f32 %v1499_v17, %v1613_v57  ;;  %v1641_v52 = vsel %vm161_vm0, %v661_v56, %v1613_v57 }
  0xb2   : > { %766 = vrot.lane.b32.xlu0 %v689_v58, %s1347_s23  ;;  %304 = vrot.lane.b32.xlu1 %v233_v55, %s1347_s23  ;;  %v174_v55 = vmin.f32 %v1419_v1, %v162_v46  ;;  %v163_v58 = vsel %vm161_vm0, %v150_v32, %v152_v34 }
  0xb3   : > { %v665_v59 = vpop.permute.xlu1 %664  ;;  %v1619_v60 = vpop.permute.xlu0 %666  ;;  %v176_v56 = vmin.f32 %v1416_v0, %v163_v58 }
  0xb4   : > { %v691_v61 = vmin.f32 %v1509_v19, %v1619_v60  ;;  %v1651_v33 = vsel %vm161_vm0, %v665_v59, %v1619_v60 }
  0xb5   : > { %v690_v32 = vmin.f32 %v1506_v18, %v1651_v33 }
  0xb6   : > { %770 = vrot.lane.b32.xlu0 %v691_v61, %s1347_s23  ;;  %332 = vrot.lane.b32.xlu1 %v183_v62, %s1347_s23  ;;  %v688_v61 = vmin.f32 %v1496_v16, %v1641_v52  ;;  %v164_v62 = vsel %vm161_vm0, %v154_v39, %v156_v38 }
  0xb7   : > { %v1626_v63 = vpop.permute.xlu0 %670  ;;  %v669_v40 = vpop.permute.xlu1 %668  ;;  %v178_v59 = vmin.f32 %v1439_v5, %v164_v62 }
  0xb8   : > { %v693_v36 = vmin.f32 %v1519_v21, %v1626_v63  ;;  %v1663_v34 = vsel %vm161_vm0, %v669_v40, %v1626_v63 }
  0xba   : > { %774 = vrot.lane.b32.xlu0 %v693_v36, %s1347_s23  ;;  %336 = vrot.lane.b32.xlu1 %v185_v37, %s1347_s23  ;;  %v165_v36 = vsel %vm161_vm0, %v158_v42, %v1580_v41  ;;  %v692_v37 = vmin.f32 %v1516_v20, %v1663_v34  ;;  %v1688_v42 = vsel %vm161_vm0, %v1587_v45, %v1585_v44 }
  0xbb   : > { %v1633_v43 = vpop.permute.xlu0 %674  ;;  %v673_v2 = vpop.permute.xlu1 %672  ;;  %v180_v40 = vmin.f32 %v1449_v7, %v165_v36 }
  0xbc   : > { %v695_v3 = vmin.f32 %v1529_v23, %v1633_v43 }
  0xbe   : > { %778 = vrot.lane.b32.xlu0 %v695_v3, %s1347_s23  ;;  %340 = vrot.lane.b32.xlu1 %v187_v49, %s1347_s23  ;;  %v1676_v3 = vsel %vm161_vm0, %v673_v2, %v1633_v43 }
  0xbf   : > { %v713_v4 = vpop.permute.xlu1 %712  ;;  %v1655_v35 = vpop.permute.xlu0 %714 }
  0xc0   : > { %v1683_v49 = vsel %vm161_vm0, %v713_v4, %v1655_v35  ;;  %v226_v4 = vmin.f32 %v1459_v9, %v1688_v42 }
  0xc1   : > { %v740_v2 = vmin.f32 %v1536_v24, %v1683_v49 }
  0xc2   : > { %250 = vrot.lane.b32.xlu0 %v174_v55, %s1347_s23  ;;  %764 = vrot.lane.b32.xlu1 %v688_v61, %s1347_s23  ;;  %v694_v55 = vmin.f32 %v1526_v22, %v1676_v3 }
  0xc3   : > { %v717_v38 = vpop.permute.xlu1 %716  ;;  %v1672_v39 = vpop.permute.xlu0 %718 }
  0xc4   : > { %v1702_v45 = vsel %vm161_vm0, %v717_v38, %v1672_v39  ;;  %v216_v38 = vsel %vm161_vm0, %v1601_v51, %v1599_v50  ;;  %v217_v51 = vsel %vm161_vm0, %v1608_v54, %v1606_v53  ;;  %v184_v54 = vmax.f32 %v1416_v0, %v163_v58 }
  0xc6   : > { %254 = vrot.lane.b32.xlu0 %v176_v56, %s1347_s23  ;;  %768 = vrot.lane.b32.xlu1 %v690_v32, %s1347_s23  ;;  %v215_v32 = vsel %vm161_vm0, %v1594_v48, %v1592_v47 }
  0xc7   : > { %v721_v61 = vpop.permute.xlu1 %720  ;;  %v1696_v56 = vpop.permute.xlu0 %722 }
  0xca   : > { %258 = vrot.lane.b32.xlu0 %v178_v59, %s1347_s23  ;;  %772 = vrot.lane.b32.xlu1 %v692_v37, %s1347_s23  ;;  %v742_v59 = vmin.f32 %v1546_v26, %v1702_v45  ;;  %v228_v37 = vmin.f32 %v1469_v11, %v215_v32 }
  0xcb   : > { %v1719_v24 = vpop.permute.xlu0 %726 }
  0xce   : > { %262 = vrot.lane.b32.xlu0 %v180_v40, %s1347_s23  ;;  %776 = vrot.lane.b32.xlu1 %v694_v55, %s1347_s23  ;;  %v1714_v40 = vsel %vm161_vm0, %v721_v61, %v1696_v56  ;;  %v725_v55 = vpop.permute.xlu1 %724 }
  0xcf   : > { %v744_v48 = vmin.f32 %v1556_v28, %v1714_v40  ;;  %v1728_v61 = vsel %vm161_vm0, %v725_v55, %v1719_v24  ;;  %v189_v55 = vmax.f32 %v1446_v6, %v1580_v41  ;;  %v188_v6 = vmax.f32 %v1449_v7, %v165_v36 }
  0xd0   : > { %v239_v41 = vmax.f32 %v1476_v12, %v1599_v50  ;;  %v697_v12 = vmax.f32 %v1499_v17, %v1613_v57  ;;  %v747_v50 = vmin.f32 %v1569_v31, %v1719_v24  ;;  %v701_v17 = vmax.f32 %v1519_v21, %v1626_v63 }
  0xd1   : > { %v236_v57 = vmax.f32 %v1469_v11, %v215_v32  ;;  %v238_v21 = vmax.f32 %v1479_v13, %v216_v38  ;;  %v751_v63 = vmax.f32 %v1549_v27, %v1672_v39  ;;  %v698_v36 = vmax.f32 %v1506_v18, %v1651_v33 }
  0xd2   : > { %290 = vrot.lane.b32.xlu0 %v226_v4, %s1347_s23  ;;  %804 = vrot.lane.b32.xlu1 %v740_v2, %s1347_s23  ;;  %v230_v2 = vmin.f32 %v1479_v13, %v216_v38  ;;  %v746_v4 = vmin.f32 %v1566_v30, %v1728_v61 }
  0xd6   : > { %294 = vrot.lane.b32.xlu0 %v228_v37, %s1347_s23  ;;  %808 = vrot.lane.b32.xlu1 %v742_v59, %s1347_s23  ;;  %v232_v59 = vmin.f32 %v1489_v15, %v217_v51  ;;  %v182_v37 = vmax.f32 %v1419_v1, %v162_v46  ;;  %v237_v46 = vmax.f32 %v1466_v10, %v1592_v47 }
  0xd7   : > { %v743_v10 = vmin.f32 %v1549_v27, %v1672_v39  ;;  %v745_v47 = vmin.f32 %v1559_v29, %v1696_v56  ;;  %v755_v27 = vmax.f32 %v1569_v31, %v1719_v24  ;;  %v700_v39 = vmax.f32 %v1516_v20, %v1663_v34 }
  0xd8   : > { %v702_v24 = vmax.f32 %v1526_v22, %v1676_v3  ;;  %v750_v34 = vmax.f32 %v1546_v26, %v1702_v45  ;;  %v752_v3 = vmax.f32 %v1556_v28, %v1714_v40 }
  0xda   : > { %298 = vrot.lane.b32.xlu0 %v230_v2, %s1347_s23  ;;  %812 = vrot.lane.b32.xlu1 %v744_v48, %s1347_s23  ;;  %v235_v48 = vmax.f32 %v1456_v8, %v1585_v44  ;;  %v186_v2 = vmax.f32 %v1439_v5, %v164_v62  ;;  %v741_v8 = vmin.f32 %v1539_v25, %v1655_v35 }
  0xdb   : > { %v241_v44 = vmax.f32 %v1486_v14, %v1606_v53  ;;  %v699_v14 = vmax.f32 %v1509_v19, %v1619_v60  ;;  %v234_v53 = vmax.f32 %v1459_v9, %v1688_v42  ;;  %v703_v19 = vmax.f32 %v1529_v23, %v1633_v43 }
  0xdc   : > { %v749_v60 = vmax.f32 %v1539_v25, %v1655_v35  ;;  %v240_v23 = vmax.f32 %v1489_v15, %v217_v51  ;;  %v753_v25 = vmax.f32 %v1559_v29, %v1696_v56  ;;  %v696_v35 = vmax.f32 %v1496_v16, %v1641_v52  ;;  %v2329_v52 = vld [vmem:[#allocation5_spill] sm:$0xff] }
  0xdd   : > { %v748_v56 = vmax.f32 %v2329_v52, %v1683_v49  ;;  %v754_v49 = vmax.f32 %v1566_v30, %v1728_v61 }
  0xde   : > { %302 = vrot.lane.b32.xlu0 %v232_v59, %s1347_s23  ;;  %816 = vrot.lane.b32.xlu1 %v746_v4, %s1347_s23 }
  0xe2   : > { %330 = vrot.lane.b32.xlu0 %v182_v37, %s1347_s23  ;;  %344 = vrot.lane.b32.xlu1 %v189_v55, %s1347_s23 }
  0xe6   : > { %334 = vrot.lane.b32.xlu0 %v184_v54, %s1347_s23  ;;  %372 = vrot.lane.b32.xlu1 %v235_v48, %s1347_s23 }
  0xea   : > { %338 = vrot.lane.b32.xlu0 %v186_v2, %s1347_s23  ;;  %376 = vrot.lane.b32.xlu1 %v237_v46, %s1347_s23 }
  0xee   : > { %342 = vrot.lane.b32.xlu0 %v188_v6, %s1347_s23  ;;  %380 = vrot.lane.b32.xlu1 %v239_v41, %s1347_s23 }
  0xf2   : > { %806 = vrot.lane.b32.xlu0 %v741_v8, %s1347_s23  ;;  %384 = vrot.lane.b32.xlu1 %v241_v44, %s1347_s23 }
  0xf6   : > { %810 = vrot.lane.b32.xlu0 %v743_v10, %s1347_s23  ;;  %846 = vrot.lane.b32.xlu1 %v697_v12, %s1347_s23 }
  0xfa   : > { %814 = vrot.lane.b32.xlu0 %v745_v47, %s1347_s23  ;;  %850 = vrot.lane.b32.xlu1 %v699_v14, %s1347_s23 }
  0xfe   : > { %818 = vrot.lane.b32.xlu0 %v747_v50, %s1347_s23  ;;  %854 = vrot.lane.b32.xlu1 %v701_v17, %s1347_s23 }
 0x102   : > { %370 = vrot.lane.b32.xlu0 %v234_v53, %s1347_s23  ;;  %858 = vrot.lane.b32.xlu1 %v703_v19, %s1347_s23 }
 0x106   : > { %374 = vrot.lane.b32.xlu0 %v236_v57, %s1347_s23  ;;  %886 = vrot.lane.b32.xlu1 %v749_v60, %s1347_s23 }
 0x108   : > { %v1798_v58 = vpop.permute.xlu1 %252 }
 0x10a   : > { %378 = vrot.lane.b32.xlu0 %v238_v21, %s1347_s23  ;;  %890 = vrot.lane.b32.xlu1 %v751_v63, %s1347_s23 }
 0x10c   : > { %v257_v43 = vpop.permute.xlu1 %256 }
 0x10e   : > { %382 = vrot.lane.b32.xlu0 %v240_v23, %s1347_s23  ;;  %894 = vrot.lane.b32.xlu1 %v753_v25, %s1347_s23 }
 0x110   : > { %v261_v62 = vpop.permute.xlu1 %260 }
 0x112   : > { %844 = vrot.lane.b32.xlu0 %v696_v35, %s1347_s23  ;;  %898 = vrot.lane.b32.xlu1 %v755_v27, %s1347_s23 }
 0x114   : > { %v265_v29 = vpop.permute.xlu1 %264 }
 0x116   : > { %848 = vrot.lane.b32.xlu0 %v698_v36, %s1347_s23 }
 0x118   : > { %v1818_v42 = vpop.permute.xlu1 %292 }
 0x11a   : > { %852 = vrot.lane.b32.xlu0 %v700_v39, %s1347_s23 }
 0x11c   : > { %v297_v31 = vpop.permute.xlu1 %296 }
 0x11e   : > { %856 = vrot.lane.b32.xlu0 %v702_v24, %s1347_s23 }
 0x120   : > { %v301_v33 = vpop.permute.xlu1 %300 }
 0x122   : > { %884 = vrot.lane.b32.xlu0 %v748_v56, %s1347_s23 }
 0x124   : > { %v767_v32 = vpop.permute.xlu0 %766  ;;  %v305_v38 = vpop.permute.xlu1 %304 }
 0x126   : > { %888 = vrot.lane.b32.xlu0 %v750_v34, %s1347_s23 }
 0x128   : > { %v771_v51 = vpop.permute.xlu0 %770  ;;  %v1832_v4 = vpop.permute.xlu1 %332 }
 0x12a   : > { %892 = vrot.lane.b32.xlu0 %v752_v3, %s1347_s23 }
 0x12c   : > { %v775_v59 = vpop.permute.xlu0 %774  ;;  %v1837_v37 = vpop.permute.xlu1 %336 }
 0x12e   : > { %896 = vrot.lane.b32.xlu0 %v754_v49, %s1347_s23 }
 0x130   : > { %v779_v45 = vpop.permute.xlu0 %778  ;;  %v1840_v55 = vpop.permute.xlu1 %340 }
 0x134   : > { %v1842_v54 = vpop.permute.xlu0 %250  ;;  %v765_v48 = vpop.permute.xlu1 %764 }
 0x135   : > { %v1845_v40 = vsel %vm161_vm0, %v765_v48, %v767_v32 }
 0x138   : > { %v255_v2 = vpop.permute.xlu0 %254  ;;  %v769_v46 = vpop.permute.xlu1 %768 }
 0x139   : > { %v1848_v6 = vsel %vm161_vm0, %v255_v2, %v257_v43  ;;  %v1851_v61 = vsel %vm161_vm0, %v769_v46, %v771_v51 }
 0x13a   : > { %v275_v19 = vmin.f32 %v1416_v0, %v1848_v6 }
 0x13c   : > { %v259_v41 = vpop.permute.xlu0 %258  ;;  %v773_v8 = vpop.permute.xlu1 %772  ;;  %v414_v25 = vrot.slane %v275_v19, 1  ;;  %v515_v43 = vrot.slane %v275_v19, 2 }
 0x13d   : > { %v1854_v44 = vsel %vm161_vm0, %v259_v41, %v261_v62  ;;  %v1857_v10 = vsel %vm161_vm0, %v773_v8, %v775_v59 }
 0x13e   : > { %v276_v63 = vmin.f32 %v1439_v5, %v1854_v44 }
 0x140   : > { %v263_v12 = vpop.permute.xlu0 %262  ;;  %v777_v47 = vpop.permute.xlu1 %776  ;;  %v518_v32 = vrot.slane %v276_v63, 2 }
 0x141   : > { %v1860_v14 = vsel %vm161_vm0, %v263_v12, %v265_v29  ;;  %v1863_v50 = vsel %vm161_vm0, %v777_v47, %v779_v45 }
 0x142   : > { %v277_v34 = vmin.f32 %v1449_v7, %v1860_v14 }
 0x144   : > { %v291_v17 = vpop.permute.xlu0 %290  ;;  %v805_v53 = vpop.permute.xlu1 %804  ;;  %v420_v8 = vrot.slane %v277_v34, 1  ;;  %v521_v12 = vrot.slane %v277_v34, 2 }
 0x148   : > { %v295_v57 = vpop.permute.xlu0 %294  ;;  %v1874_v23 = vpop.permute.xlu1 %808 }
 0x149   : > { %v1868_v60 = vsel %vm161_vm0, %v295_v57, %v297_v31  ;;  %v417_v31 = vrot.slane %v276_v63, 1 }
 0x14a   : > { %v315_v21 = vmin.f32 %v1469_v11, %v1868_v60 }
 0x14c   : > { %v415_v35 = vrot.slane %v315_v21, 1  ;;  %v516_v27 = vrot.slane %v315_v21, 2  ;;  %v299_v62 = vpop.permute.xlu0 %298 }
 0x14d   : > { %v1877_v36 = vsel %vm161_vm0, %v299_v62, %v301_v33  ;;  %v1887_v33 = vpop.permute.xlu1 %812 }
 0x14e   : > { %v416_v29 = vsel %vm410_vm1, %v414_v25, %v415_v35  ;;  %v517_v39 = vsel %vm511_vm2, %v515_v43, %v516_v27  ;;  %v316_v24 = vmin.f32 %v1479_v13, %v1877_v36 }
 0x14f   : > { %v428_v56 = vmax.f32 %v275_v19, %v416_v29 }
 0x150   : > { %v418_v51 = vrot.slane %v316_v24, 1  ;;  %v519_v3 = vrot.slane %v316_v24, 2  ;;  %v303_v59 = vpop.permute.xlu0 %302  ;;  %v266_v24 = vsel %vm161_vm0, %v1842_v54, %v1798_v58  ;;  %v1926_v58 = vmax.f32 %v1496_v16, %v1845_v40 }
 0x151   : > { %v1885_v49 = vmax.f32 %v428_v56, %v517_v39  ;;  %v1890_v45 = vsel %vm161_vm0, %v303_v59, %v305_v38  ;;  %v1900_v43 = vpop.permute.xlu1 %816  ;;  %v278_v54 = vmax.f32 %v1419_v1, %v266_v24 }
 0x152   : > { %v419_v48 = vsel %vm410_vm1, %v417_v31, %v418_v51  ;;  %v520_v2 = vsel %vm511_vm2, %v518_v32, %v519_v3  ;;  %v317_v46 = vmin.f32 %v1489_v15, %v1890_v45  ;;  %v274_v32 = vmin.f32 %v1419_v1, %v266_v24 }
 0x153   : > { %v429_v41 = vmax.f32 %v276_v63, %v419_v48  ;;  %v306_v63 = vsel %vm161_vm0, %v291_v17, %v1818_v42  ;;  %v1919_v42 = vmin.f32 %v1506_v18, %v1851_v61  ;;  %v279_v1 = vmax.f32 %v1416_v0, %v1848_v6 }
 0x154   : > { %v421_v47 = vrot.slane %v317_v46, 1  ;;  %v522_v19 = vrot.slane %v317_v46, 2  ;;  %v331_v57 = vpop.permute.xlu0 %330  ;;  %v314_v31 = vmin.f32 %v1459_v9, %v306_v63  ;;  %v411_v48 = vrot.slane %v274_v32, 1 }
 0x155   : > { %v1896_v21 = vmax.f32 %v429_v41, %v520_v2  ;;  %v345_v39 = vpop.permute.xlu1 %344  ;;  %v1931_v2 = vmin.f32 %v1516_v20, %v1857_v10  ;;  %v281_v6 = vmax.f32 %v1449_v7, %v1860_v14  ;;  %v318_v14 = vmax.f32 %v1459_v9, %v306_v63 }
 0x156   : > { %v422_v25 = vsel %vm410_vm1, %v420_v8, %v421_v47  ;;  %v523_v38 = vsel %vm511_vm2, %v521_v12, %v522_v19  ;;  %v412_v3 = vrot.slane %v314_v31, 1  ;;  %v512_v8 = vrot.slane %v274_v32, 2 }
 0x157   : > { %v430_v35 = vmax.f32 %v277_v34, %v422_v25  ;;  %v1913_v34 = vmin.f32 %v1496_v16, %v1845_v40  ;;  %v1941_v16 = vmax.f32 %v1506_v18, %v1851_v61  ;;  %v927_v19 = vrot.slane %v1919_v42, 1 }
 0x158   : > { %v335_v27 = vpop.permute.xlu0 %334  ;;  %v413_v40 = vsel %vm410_vm1, %v411_v48, %v412_v3  ;;  %v1027_v25 = vrot.slane %v1919_v42, 2  ;;  %v1956_v18 = vmax.f32 %v1516_v20, %v1857_v10  ;;  %v346_v61 = vsel %vm161_vm0, %v331_v57, %v1832_v4 }
 0x159   : > { %v1902_v62 = vmax.f32 %v430_v35, %v523_v38  ;;  %v1915_v51 = vpop.permute.xlu1 %372  ;;  %v924_v46 = vrot.slane %v1913_v34, 1  ;;  %v1024_v41 = vrot.slane %v1913_v34, 2  ;;  %v280_v38 = vmax.f32 %v1439_v5, %v1854_v44 }
 0x15a   : > { %v513_v35 = vrot.slane %v314_v31, 2  ;;  %v1965_v3 = vmax.f32 %v1526_v22, %v1863_v50  ;;  %v427_v44 = vmax.f32 %v274_v32, %v413_v40  ;;  %v347_v31 = vsel %vm161_vm0, %v335_v27, %v1837_v37 }
 0x15b   : > { %v1982_v37 = vmax.f32 %v1469_v11, %v1868_v60  ;;  %v1984_v27 = vmin.f32 %v278_v54, %v346_v61  ;;  %v2001_v11 = vmax.f32 %v1479_v13, %v1877_v36  ;;  %v2005_v60 = vmax.f32 %v1489_v15, %v1890_v45 }
 0x15c   : > { %v339_v29 = vpop.permute.xlu0 %338 }
 0x15d   : > { %v1952_v24 = vpop.permute.xlu1 %376  ;;  %v348_v10 = vsel %vm161_vm0, %v339_v29, %v1840_v55  ;;  %v1986_v55 = vmin.f32 %v279_v1, %v347_v31  ;;  %v1988_v29 = vmax.f32 %v279_v1, %v347_v31  ;;  %v475_v13 = vrot.slane %v1984_v27, 1 }
 0x15e   : > { %v1992_v32 = vmin.f32 %v280_v38, %v348_v10  ;;  %v1994_v9 = vmax.f32 %v280_v38, %v348_v10 }
 0x15f   : > { %v442_v36 = vrot.slane %v1988_v29, 1  ;;  %v478_v15 = vrot.slane %v1986_v55, 1 }
 0x160   : > { %v343_v56 = vpop.permute.xlu0 %342  ;;  %v481_v38 = vrot.slane %v1992_v32, 1 }
 0x161   : > { %v349_v57 = vsel %vm161_vm0, %v343_v56, %v345_v39  ;;  %v1996_v63 = vpop.permute.xlu1 %380 }
 0x162   : > { %v2007_v56 = vmax.f32 %v281_v6, %v349_v57  ;;  %v2011_v1 = vmin.f32 %v281_v6, %v349_v57 }
 0x164   : > { %v807_v59 = vpop.permute.xlu0 %806 }
 0x165   : > { %v1922_v17 = vsel %vm161_vm0, %v805_v53, %v807_v59  ;;  %v1937_v53 = vmin.f32 %v1526_v22, %v1863_v50  ;;  %v514_v22 = vsel %vm511_vm2, %v512_v8, %v513_v35  ;;  %v1977_v50 = vmax.f32 %v278_v54, %v346_v61 }
 0x166   : > { %v828_v12 = vmin.f32 %v2329_v52, %v1922_v17 }
 0x167   : > { %v933_v5 = vrot.slane %v1937_v53, 1  ;;  %v1033_v20 = vrot.slane %v1937_v53, 2  ;;  %v439_v8 = vrot.slane %v1977_v50, 1 }
 0x168   : > { %v811_v47 = vpop.permute.xlu0 %810  ;;  %v925_v59 = vrot.slane %v828_v12, 1  ;;  %v1025_v40 = vrot.slane %v828_v12, 2 }
 0x169   : > { %v821_v7 = vsel %vm161_vm0, %v1874_v23, %v811_v47  ;;  %v1990_v23 = vmax.f32 %v427_v44, %v514_v22  ;;  %v2031_v22 = vmax.f32 %v2329_v52, %v1922_v17 }
 0x16a   : > { %v829_v39 = vmin.f32 %v1546_v26, %v821_v7  ;;  %v926_v54 = vsel %vm410_vm1, %v924_v46, %v925_v59  ;;  %v445_v46 = vrot.slane %v1994_v9, 1  ;;  %v2027_v59 = vpop.permute.xlu1 %384  ;;  %v1026_v57 = vsel %vm511_vm2, %v1024_v41, %v1025_v40 }
 0x16b   : > { %v940_v35 = vmax.f32 %v1913_v34, %v926_v54  ;;  %v2044_v10 = vmax.f32 %v1546_v26, %v821_v7 }
 0x16c   : > { %v815_v4 = vpop.permute.xlu0 %814  ;;  %v928_v12 = vrot.slane %v829_v39, 1 }
 0x16d   : > { %v2041_v6 = vmax.f32 %v940_v35, %v1026_v57 }
 0x16e   : > { %v2049_v52 = vsel %vm410_vm1, %v927_v19, %v928_v12  ;;  %v2070_v40 = vpop.permute.xlu1 %846 }
 0x170   : > { %v819_v48 = vpop.permute.xlu0 %818 }
 0x171   : > { %v2015_v47 = vsel %vm161_vm0, %v1900_v43, %v819_v48  ;;  %v1028_v43 = vrot.slane %v829_v39, 2  ;;  %v822_v39 = vsel %vm161_vm0, %v1887_v33, %v815_v4 }
 0x172   : > { %v831_v45 = vmin.f32 %v1566_v30, %v2015_v47  ;;  %v2059_v26 = vmin.f32 %v1556_v28, %v822_v39  ;;  %v2062_v7 = vmax.f32 %v1556_v28, %v822_v39  ;;  %v941_v39 = vmax.f32 %v1919_v42, %v2049_v52 }
 0x173   : > { %v2055_v33 = vsel %vm511_vm2, %v1027_v25, %v1028_v43 }
 0x174   : > { %v934_v61 = vrot.slane %v831_v45, 1  ;;  %v1034_v44 = vrot.slane %v831_v45, 2  ;;  %v371_v31 = vpop.permute.xlu0 %370 }
 0x175   : > { %v386_v54 = vsel %vm161_vm0, %v371_v31, %v1915_v51 }
 0x176   : > { %v935_v48 = vsel %vm410_vm1, %v933_v5, %v934_v61  ;;  %v394_v45 = vmin.f32 %v318_v14, %v386_v54  ;;  %v398_v0 = vmax.f32 %v318_v14, %v386_v54  ;;  %v1035_v51 = vsel %vm511_vm2, %v1033_v20, %v1034_v44 }
 0x177   : > { %v943_v34 = vmax.f32 %v1937_v53, %v935_v48 }
 0x178   : > { %v440_v17 = vrot.slane %v398_v0, 1  ;;  %v476_v41 = vrot.slane %v394_v45, 1  ;;  %v375_v5 = vpop.permute.xlu0 %374 }
 0x179   : > { %v2064_v19 = vmax.f32 %v943_v34, %v1035_v51  ;;  %v387_v53 = vsel %vm161_vm0, %v375_v5, %v1952_v24 }
 0x17a   : > { %v441_v4 = vsel %vm410_vm1, %v439_v8, %v440_v17  ;;  %v460_v25 = vmin.f32 %v398_v0, %v440_v17  ;;  %v477_v14 = vsel %vm410_vm1, %v475_v13, %v476_v41  ;;  %v496_v20 = vmin.f32 %v394_v45, %v476_v41 }
 0x17b   : > { %v459_v35 = vmin.f32 %v1977_v50, %v441_v4  ;;  %v495_v12 = vmin.f32 %v1984_v27, %v477_v14  ;;  %v503_v28 = vmax.f32 %v1984_v27, %v477_v14  ;;  %v504_v43 = vmax.f32 %v394_v45, %v476_v41 }
 0x17c   : > { %v541_v61 = vrot.slane %v496_v20, 1  ;;  %v569_v44 = vrot.slane %v460_v25, 1  ;;  %v395_v31 = vmin.f32 %v1982_v37, %v387_v53  ;;  %v399_v24 = vmax.f32 %v1982_v37, %v387_v53  ;;  %v379_v8 = vpop.permute.xlu0 %378 }
 0x17d   : > { %v540_v0 = vrot.slane %v495_v12, 1  ;;  %v568_v57 = vrot.slane %v459_v35, 1  ;;  %v596_v13 = vrot.slane %v503_v28, 1  ;;  %v597_v54 = vrot.slane %v504_v43, 1 }
 0x17e   : > { %v443_v48 = vrot.slane %v399_v24, 1  ;;  %v479_v34 = vrot.slane %v395_v31, 1  ;;  %v388_v45 = vsel %vm161_vm0, %v379_v8, %v1996_v63  ;;  %v2090_v63 = vpop.permute.xlu1 %850 }
 0x17f   : > { %v542_v51 = vsel %vm410_vm1, %v540_v0, %v541_v61  ;;  %v570_v17 = vsel %vm410_vm1, %v568_v57, %v569_v44  ;;  %v598_v37 = vsel %vm410_vm1, %v596_v13, %v597_v54  ;;  %v396_v41 = vmin.f32 %v2001_v11, %v388_v45 }
 0x180   : > { %v556_v5 = vmax.f32 %v1984_v27, %v542_v51  ;;  %v584_v53 = vmin.f32 %v1977_v50, %v570_v17  ;;  %v444_v4 = vsel %vm410_vm1, %v442_v36, %v443_v48  ;;  %v462_v25 = vmin.f32 %v399_v24, %v443_v48  ;;  %v383_v14 = vpop.permute.xlu0 %382 }
 0x181   : > { %v461_v20 = vmin.f32 %v1988_v29, %v444_v4  ;;  %v480_v35 = vsel %vm410_vm1, %v478_v15, %v479_v34  ;;  %v498_v12 = vmin.f32 %v395_v31, %v479_v34  ;;  %v506_v27 = vmax.f32 %v395_v31, %v479_v34 }
 0x182   : > { %v612_v28 = vmin.f32 %v556_v5, %v598_v37  ;;  %v497_v50 = vmin.f32 %v1986_v55, %v480_v35  ;;  %v505_v43 = vmax.f32 %v1986_v55, %v480_v35  ;;  %v572_v36 = vrot.slane %v462_v25, 1  ;;  %v2111_v5 = vpop.permute.xlu1 %854 }
 0x183   : > { %v544_v61 = vrot.slane %v498_v12, 1  ;;  %v571_v44 = vrot.slane %v461_v20, 1  ;;  %v600_v24 = vrot.slane %v506_v27, 1  ;;  %v400_v8 = vmax.f32 %v2001_v11, %v388_v45 }
 0x184   : > { %v616_v0 = vmin.f32 %v612_v28, %v584_v53  ;;  %v620_v57 = vmax.f32 %v612_v28, %v584_v53  ;;  %v543_v13 = vrot.slane %v497_v50, 1  ;;  %v599_v54 = vrot.slane %v505_v43, 1  ;;  %v2102_v15 = vpop.permute.xlu0 %844 }
 0x185   : > { %v573_v31 = vsel %vm410_vm1, %v571_v44, %v572_v36  ;;  %v446_v48 = vrot.slane %v400_v8, 1  ;;  %v482_v34 = vrot.slane %v396_v41, 1  ;;  %v389_v51 = vsel %vm161_vm0, %v383_v14, %v2027_v59 }
 0x186   : > { %v624_v17 = vmax.f32 %v1990_v23, %v616_v0  ;;  %v545_v37 = vsel %vm410_vm1, %v543_v13, %v544_v61  ;;  %v585_v11 = vmin.f32 %v1988_v29, %v573_v31  ;;  %v601_v45 = vsel %vm410_vm1, %v599_v54, %v600_v24  ;;  %v859_v54 = vpop.permute.xlu1 %858 }
 0x187   : > { %v557_v53 = vmax.f32 %v1986_v55, %v545_v37  ;;  %v447_v4 = vsel %vm410_vm1, %v445_v46, %v446_v48  ;;  %v464_v25 = vmin.f32 %v400_v8, %v446_v48  ;;  %v483_v59 = vsel %vm410_vm1, %v481_v38, %v482_v34 }
 0x188   : > { %v628_v23 = vmin.f32 %v624_v17, %v620_v57  ;;  %v463_v14 = vmin.f32 %v1994_v9, %v447_v4  ;;  %v499_v29 = vmin.f32 %v1992_v32, %v483_v59  ;;  %v500_v20 = vmin.f32 %v396_v41, %v482_v34  ;;  %v849_v35 = vpop.permute.xlu0 %848 }
 0x189   : > { %v613_v12 = vmin.f32 %v557_v53, %v601_v45  ;;  %v507_v27 = vmax.f32 %v1992_v32, %v483_v59  ;;  %v508_v55 = vmax.f32 %v396_v41, %v482_v34  ;;  %v575_v28 = vrot.slane %v464_v25, 1 }
 0x18a   : > { %632 = vst [vmem:[%s2123_s26] sm:$0xff] %v628_v23  ;;  %v546_v46 = vrot.slane %v499_v29, 1  ;;  %v547_v50 = vrot.slane %v500_v20, 1  ;;  %v574_v43 = vrot.slane %v463_v14, 1  ;;  %v397_v38 = vmin.f32 %v2005_v60, %v389_v51 }
 0x18b   : > { %v617_v36 = vmin.f32 %v613_v12, %v585_v11  ;;  %v621_v61 = vmax.f32 %v613_v12, %v585_v11  ;;  %v602_v44 = vrot.slane %v507_v27, 1  ;;  %v603_v24 = vrot.slane %v508_v55, 1 }
 0x18c   : > { %v548_v8 = vsel %vm410_vm1, %v546_v46, %v547_v50  ;;  %v576_v0 = vsel %vm410_vm1, %v574_v43, %v575_v28  ;;  %v401_v41 = vmax.f32 %v2005_v60, %v389_v51  ;;  %v485_v57 = vrot.slane %v397_v38, 1  ;;  %v853_v13 = vpop.permute.xlu0 %852 }
 0x18d   : > { %v625_v31 = vmax.f32 %v1885_v49, %v617_v36  ;;  %v558_v48 = vmax.f32 %v1992_v32, %v548_v8  ;;  %v586_v34 = vmin.f32 %v1994_v9, %v576_v0  ;;  %v604_v17 = vsel %vm410_vm1, %v602_v44, %v603_v24  ;;  %v887_v36 = vpop.permute.xlu1 %886 }
 0x18e   : > { %v449_v37 = vrot.slane %v401_v41, 1  ;;  %v2330_v11 = vrot.slane %v2011_v1, 1  ;;  %v502_v53 = vmin.f32 %v397_v38, %v485_v57  ;;  %v510_v4 = vmax.f32 %v397_v38, %v485_v57 }
 0x18f   : > { %v629_v60 = vmin.f32 %v625_v31, %v621_v61  ;;  %v614_v51 = vmin.f32 %v558_v48, %v604_v17  ;;  %v2331_v32 = vrot.slane %v2007_v56, 1  ;;  %v860_v50 = vsel %vm161_vm0, %v2102_v15, %v2070_v40 }
 0x190   : > { %v486_v45 = vsel %vm410_vm1, %v2330_v11, %v485_v57  ;;  %v466_v9 = vmin.f32 %v401_v41, %v449_v37  ;;  %v550_v23 = vrot.slane %v502_v53, 1  ;;  %v606_v14 = vrot.slane %v510_v4, 1  ;;  %v857_v29 = vpop.permute.xlu0 %856 }
 0x191   : > { %v501_v25 = vmin.f32 %v2011_v1, %v486_v45  ;;  %v509_v49 = vmax.f32 %v2011_v1, %v486_v45  ;;  %v450_v59 = vsel %vm410_vm1, %v2331_v32, %v449_v37  ;;  %633 = vst [vmem:[%s2123_s26 + $0x10] sm:$0xff] %v629_v60  ;;  %v618_v20 = vmin.f32 %v614_v51, %v586_v34  ;;  %v891_v45 = vpop.permute.xlu1 %890 }
 0x192   : > { %v622_v12 = vmax.f32 %v614_v51, %v586_v34  ;;  %v465_v27 = vmin.f32 %v2007_v56, %v450_v59  ;;  %v578_v28 = vrot.slane %v466_v9, 1  ;;  %v861_v43 = vsel %vm161_vm0, %v849_v35, %v2090_v63 }
 0x193   : > { %v549_v55 = vrot.slane %v501_v25, 1  ;;  %v605_v46 = vrot.slane %v509_v49, 1  ;;  %v931_v38 = vrot.slane %v2059_v26, 1  ;;  %v626_v61 = vmax.f32 %v1896_v21, %v618_v20 }
 0x194   : > { %v577_v24 = vrot.slane %v465_v27, 1  ;;  %v1031_v8 = vrot.slane %v2059_v26, 2  ;;  %v2156_v40 = vmin.f32 %v1926_v58, %v860_v50  ;;  %v885_v15 = vpop.permute.xlu0 %884  ;;  %v872_v57 = vmax.f32 %v1926_v58, %v860_v50 }
 0x195   : > { %v551_v44 = vsel %vm410_vm1, %v549_v55, %v550_v23  ;;  %v607_v41 = vsel %vm410_vm1, %v605_v46, %v606_v14  ;;  %v630_v63 = vmin.f32 %v626_v61, %v622_v12  ;;  %v2161_v21 = vmin.f32 %v1941_v16, %v861_v43 }
 0x196   : > { %v559_v0 = vmax.f32 %v2011_v1, %v551_v44  ;;  %v579_v35 = vsel %vm410_vm1, %v577_v24, %v578_v28  ;;  %v2167_v31 = vmax.f32 %v941_v39, %v2055_v33  ;;  %v2171_v34 = vmax.f32 %v1941_v16, %v861_v43 }
 0x197   : > { %v587_v1 = vmin.f32 %v2007_v56, %v579_v35  ;;  %v2332_v17 = vrot.slane %v1931_v2, 1  ;;  %v2180_v58 = vmax.f32 %v1566_v30, %v2015_v47  ;;  %634 = vst [vmem:[%s2123_s26 + $0x20] sm:$0xff] %v630_v63  ;;  %v862_v42 = vsel %vm161_vm0, %v853_v13, %v2111_v5 }
 0x198   : > { %v615_v48 = vmin.f32 %v559_v0, %v607_v41  ;;  %v900_v52 = vsel %vm161_vm0, %v885_v15, %v887_v36  ;;  %v988_v16 = vrot.slane %v2156_v40, 1  ;;  %v863_v39 = vsel %vm161_vm0, %v857_v29, %v859_v54  ;;  %v889_v11 = vpop.permute.xlu0 %888  ;;  %v895_v15 = vpop.permute.xlu1 %894 }
 0x199   : > { %v2176_v37 = vsel %vm410_vm1, %v2332_v17, %v931_v38  ;;  %v952_v53 = vrot.slane %v872_v57, 1  ;;  %v991_v4 = vrot.slane %v2161_v21, 1  ;;  %v908_v30 = vmin.f32 %v2031_v22, %v900_v52 }
 0x19a   : > { %v619_v56 = vmin.f32 %v615_v48, %v587_v1  ;;  %v623_v33 = vmax.f32 %v615_v48, %v587_v1  ;;  %v912_v47 = vmax.f32 %v2031_v22, %v900_v52  ;;  %v955_v5 = vrot.slane %v2171_v34, 1 }
 0x19b   : > { %v2194_v13 = vmin.f32 %v1956_v18, %v862_v42  ;;  %v901_v51 = vsel %vm161_vm0, %v889_v11, %v891_v45  ;;  %v2198_v54 = vmax.f32 %v1956_v18, %v862_v42  ;;  %v2201_v25 = vmin.f32 %v1965_v3, %v863_v39 }
 0x19c   : > { %v627_v60 = vmax.f32 %v1902_v62, %v619_v56  ;;  %v953_v49 = vrot.slane %v912_v47, 1  ;;  %v989_v32 = vrot.slane %v908_v30, 1  ;;  %v2204_v22 = vmax.f32 %v1965_v3, %v863_v39  ;;  %v893_v61 = vpop.permute.xlu0 %892 }
 0x19d   : > { %v909_v62 = vmin.f32 %v2044_v10, %v901_v51  ;;  %v913_v9 = vmax.f32 %v2044_v10, %v901_v51  ;;  %v958_v51 = vrot.slane %v2198_v54, 1 }
 0x19e   : > { %v631_v59 = vmin.f32 %v627_v60, %v623_v33  ;;  %v954_v23 = vsel %vm410_vm1, %v952_v53, %v953_v49  ;;  %v973_v14 = vmin.f32 %v912_v47, %v953_v49  ;;  %v990_v29 = vsel %vm410_vm1, %v988_v16, %v989_v32 }
 0x19f   : > { %v1009_v18 = vmin.f32 %v908_v30, %v989_v32  ;;  %v972_v20 = vmin.f32 %v872_v57, %v954_v23  ;;  %v1008_v12 = vmin.f32 %v2156_v40, %v990_v29  ;;  %v1016_v27 = vmax.f32 %v2156_v40, %v990_v29 }
 0x1a0   : > { %635 = vst [vmem:[%s2123_s26 + $0x30] sm:$0xff] %v631_v59  ;;  %v1017_v55 = vmax.f32 %v908_v30, %v989_v32  ;;  %v1081_v3 = vrot.slane %v973_v14, 1  ;;  %v956_v46 = vrot.slane %v913_v9, 1  ;;  %v992_v50 = vrot.slane %v909_v62, 1 }
 0x1a1   : > { %v1053_v28 = vrot.slane %v1009_v18, 1  ;;  %v1052_v43 = vrot.slane %v1008_v12, 1  ;;  %v1080_v38 = vrot.slane %v972_v20, 1  ;;  %v1108_v10 = vrot.slane %v1016_v27, 1 }
 0x1a2   : > { %v1109_v36 = vrot.slane %v1017_v55, 1  ;;  %v957_v44 = vsel %vm410_vm1, %v955_v5, %v956_v46  ;;  %v975_v24 = vmin.f32 %v913_v9, %v956_v46  ;;  %v993_v0 = vsel %vm410_vm1, %v991_v4, %v992_v50 }
 0x1a3   : > { %v1011_v41 = vmin.f32 %v909_v62, %v992_v50  ;;  %v1054_v63 = vsel %vm410_vm1, %v1052_v43, %v1053_v28  ;;  %v1082_v35 = vsel %vm410_vm1, %v1080_v38, %v1081_v3  ;;  %v974_v48 = vmin.f32 %v2171_v34, %v957_v44 }
 0x1a4   : > { %v1110_v1 = vsel %vm410_vm1, %v1108_v10, %v1109_v36  ;;  %v1068_v17 = vmax.f32 %v2156_v40, %v1054_v63  ;;  %v1096_v42 = vmin.f32 %v872_v57, %v1082_v35  ;;  %v1010_v52 = vmin.f32 %v2161_v21, %v993_v0  ;;  %v897_v57 = vpop.permute.xlu0 %896 }
 0x1a5   : > { %v1018_v56 = vmax.f32 %v2161_v21, %v993_v0  ;;  %v1019_v33 = vmax.f32 %v909_v62, %v992_v50  ;;  %v1056_v16 = vrot.slane %v1011_v41, 1  ;;  %v1083_v39 = vrot.slane %v974_v48, 1  ;;  %v899_v62 = vpop.permute.xlu1 %898 }
 0x1a6   : > { %v1084_v11 = vrot.slane %v975_v24, 1  ;;  %v1124_v45 = vmin.f32 %v1068_v17, %v1110_v1  ;;  %v1055_v53 = vrot.slane %v1010_v52, 1  ;;  %v902_v30 = vsel %vm161_vm0, %v893_v61, %v895_v15 }
 0x1a7   : > { %v1111_v4 = vrot.slane %v1018_v56, 1  ;;  %v1112_v60 = vrot.slane %v1019_v33, 1  ;;  %v910_v5 = vmin.f32 %v2062_v7, %v902_v30  ;;  %v914_v40 = vmax.f32 %v2062_v7, %v902_v30 }
 0x1a8   : > { %v1085_v47 = vsel %vm410_vm1, %v1083_v39, %v1084_v11  ;;  %v994_v49 = vrot.slane %v2194_v13, 1  ;;  %v1128_v32 = vmin.f32 %v1124_v45, %v1096_v42  ;;  %v1057_v59 = vsel %vm410_vm1, %v1055_v53, %v1056_v16 }
 0x1a9   : > { %v1132_v9 = vmax.f32 %v1124_v45, %v1096_v42  ;;  %v1069_v23 = vmax.f32 %v2161_v21, %v1057_v59  ;;  %v959_v14 = vrot.slane %v914_v40, 1  ;;  %v995_v29 = vrot.slane %v910_v5, 1 }
 0x1aa   : > { %v1136_v18 = vmax.f32 %v2041_v6, %v1128_v32  ;;  %v1097_v20 = vmin.f32 %v2171_v34, %v1085_v47  ;;  %v1113_v7 = vsel %vm410_vm1, %v1111_v4, %v1112_v60  ;;  %v903_v12 = vsel %vm161_vm0, %v897_v57, %v899_v62 }
 0x1ab   : > { %v1125_v27 = vmin.f32 %v1069_v23, %v1113_v7  ;;  %v960_v55 = vsel %vm410_vm1, %v958_v51, %v959_v14  ;;  %v977_v28 = vmin.f32 %v914_v40, %v959_v14  ;;  %v996_v3 = vsel %vm410_vm1, %v994_v49, %v995_v29 }
 0x1ac   : > { %v1140_v46 = vmin.f32 %v1136_v18, %v1132_v9  ;;  %v976_v21 = vmin.f32 %v2198_v54, %v960_v55  ;;  %v1012_v50 = vmin.f32 %v2194_v13, %v996_v3  ;;  %v1013_v43 = vmin.f32 %v910_v5, %v995_v29 }
 0x1ad   : > { %v1129_v6 = vmin.f32 %v1125_v27, %v1097_v20  ;;  %v1133_v38 = vmax.f32 %v1125_v27, %v1097_v20  ;;  %v1020_v34 = vmax.f32 %v2194_v13, %v996_v3  ;;  %v1021_v10 = vmax.f32 %v910_v5, %v995_v29 }
 0x1ae   : > { %1144 = vst [vmem:[%s2123_s26 + $0x8] sm:$0xff] %v1140_v46  ;;  %v1058_v36 = vrot.slane %v1012_v50, 1  ;;  %v1059_v61 = vrot.slane %v1013_v43, 1  ;;  %v1086_v44 = vrot.slane %v976_v21, 1  ;;  %v1087_v24 = vrot.slane %v977_v28, 1 }
 0x1af   : > { %v1137_v0 = vmax.f32 %v2167_v31, %v1129_v6  ;;  %v1114_v41 = vrot.slane %v1020_v34, 1  ;;  %v1115_v15 = vrot.slane %v1021_v10, 1  ;;  %v911_v63 = vmin.f32 %v2180_v58, %v903_v12 }
 0x1b0   : > { %v1030_v35 = vrot.slane %v1931_v2, 2  ;;  %v1060_v1 = vsel %vm410_vm1, %v1058_v36, %v1059_v61  ;;  %v1088_v48 = vsel %vm410_vm1, %v1086_v44, %v1087_v24  ;;  %v915_v17 = vmax.f32 %v2180_v58, %v903_v12 }
 0x1b1   : > { %v942_v42 = vmax.f32 %v1931_v2, %v2176_v37  ;;  %v961_v52 = vrot.slane %v2204_v22, 1  ;;  %v1141_v56 = vmin.f32 %v1137_v0, %v1133_v38  ;;  %v1070_v31 = vmax.f32 %v2194_v13, %v1060_v1 }
 0x1b2   : > { %v997_v33 = vrot.slane %v2201_v25, 1  ;;  %v1116_v16 = vsel %vm410_vm1, %v1114_v41, %v1115_v15  ;;  %v962_v39 = vrot.slane %v915_v17, 1  ;;  %v998_v11 = vrot.slane %v911_v63, 1 }
 0x1b3   : > { %v1032_v45 = vsel %vm511_vm2, %v1030_v35, %v1031_v8  ;;  %1145 = vst [vmem:[%s2123_s26 + $0x18] sm:$0xff] %v1141_v56  ;;  %v1098_v58 = vmin.f32 %v2198_v54, %v1088_v48  ;;  %v1126_v53 = vmin.f32 %v1070_v31, %v1116_v16 }
 0x1b4   : > { %v963_v2 = vsel %vm410_vm1, %v961_v52, %v962_v39  ;;  %v979_v37 = vmin.f32 %v915_v17, %v962_v39  ;;  %v999_v4 = vsel %vm410_vm1, %v997_v33, %v998_v11  ;;  %v1015_v13 = vmin.f32 %v911_v63, %v998_v11 }
 0x1b5   : > { %v1042_v30 = vmax.f32 %v942_v42, %v1032_v45  ;;  %v1130_v47 = vmin.f32 %v1126_v53, %v1098_v58  ;;  %v978_v60 = vmin.f32 %v2204_v22, %v963_v2  ;;  %v1014_v5 = vmin.f32 %v2201_v25, %v999_v4 }
 0x1b6   : > { %v1022_v26 = vmax.f32 %v2201_v25, %v999_v4  ;;  %v1023_v8 = vmax.f32 %v911_v63, %v998_v11  ;;  %v1062_v40 = vrot.slane %v1015_v13, 1  ;;  %v1090_v57 = vrot.slane %v979_v37, 1 }
 0x1b7   : > { %v1134_v54 = vmax.f32 %v1126_v53, %v1098_v58  ;;  %v1138_v51 = vmax.f32 %v1042_v30, %v1130_v47  ;;  %v1061_v49 = vrot.slane %v1014_v5, 1  ;;  %v1089_v32 = vrot.slane %v978_v60, 1 }
 0x1b8   : > { %v1117_v59 = vrot.slane %v1022_v26, 1  ;;  %v1118_v62 = vrot.slane %v1023_v8, 1 }
 0x1b9   : > { %v1142_v9 = vmin.f32 %v1138_v51, %v1134_v54  ;;  %v1063_v23 = vsel %vm410_vm1, %v1061_v49, %v1062_v40  ;;  %v1091_v14 = vsel %vm410_vm1, %v1089_v32, %v1090_v57 }
 0x1ba   : > { %v1071_v29 = vmax.f32 %v2201_v25, %v1063_v23  ;;  %v1099_v18 = vmin.f32 %v2204_v22, %v1091_v14  ;;  %v1119_v20 = vsel %vm410_vm1, %v1117_v59, %v1118_v62 }
 0x1bb   : > { %1146 = vst [vmem:[%s2123_s26 + $0x28] sm:$0xff] %v1142_v9 }
 0x1bc   : > { %v1127_v7 = vmin.f32 %v1071_v29, %v1119_v20 }
 0x1be   : > { %v1131_v12 = vmin.f32 %v1127_v7, %v1099_v18  ;;  %v1135_v27 = vmax.f32 %v1127_v7, %v1099_v18 }
 0x1c0   : > { %v1139_v55 = vmax.f32 %v2064_v19, %v1131_v12 }
 0x1c2   : > { %v1143_v25 = vmin.f32 %v1139_v55, %v1135_v27 }
 0x1c4   : > { %1147 = vst [vmem:[%s2123_s26 + $0x38] sm:$0xff] %v1143_v25 }
 0x1c5   : > { %1296 = shalt.err (!%p1293_p3)
}
 0x1c6   : > { %s1297_s13 = scalar_lea.hbm %s2274_s2, 1024  ;;  %s1301_s19 = scalar_lea.hbm %s2323_s1, 2048 }
 0x1c7   : > { %p1298_p4 = scmp.ne.s32.totalorder %s2274_s2, %s1297_s13  ;;  %p1302_p9 = scmp.lt.u32.totalorder %s2274_s2, %s2323_s1 }
 0x1c8   : > { %p1303_p10 = scmp.lt.u32.totalorder %s1301_s19, %s1297_s13  ;;  %p1305_p12 = scmp.lt.u32.totalorder %s1297_s13, %s2274_s2 }
 0x1c9   : > { %p1299_p7 = pnand %p1298_p4, %p1399_p5 }
 0x1ca   : > { %p1304_p11 = por %p1303_p10, %p1302_p9 }
 0x1cb   : > { %p1300_p8 = pneg %p1299_p7 }
 0x1cc   : > { %p1306_p13 = por %p1305_p12, %p1304_p11 }
 0x1ce   : > { %p1307_p0 = pnand %p1306_p13, %p1300_p8 }
 0x1d0   : > { %1310 = shalt.err (!%p1307_p0)
}
 0x1d1   : > { %s1349_s22 = smov 128   ;;  %s1350_s23 = smov 8  }
 0x1d2   : > { %1241 = dma.vmem_to_hbm [thread:$0]  (%p1399_p5), %s2276_s28, 1024, %s2274_s2, %s2281_s3, %s1349_s22, %s1349_s22, %s1350_s23  }
 0x1d3 PF: > { %p1247_p1 = scmp.ge.s32.totalorder %s1345_s9, 2  ;;  %s1178_s24 = sand.u32 1, %s1333_s6  }
 0x1d4   : > { %s1179_s25 = scalar_lea.sflag [#allocation3], %s1178_s24 }
 0x1d5   : > { %p1244_p2 = pnand %p1247_p1, %p1403_p6 }
 0x1d7   : > { %1328 = dma.done.wait (!%p1244_p2), %s1179_s25, 1024  }
 0x1d8   : > { %1330 = vsyncadd (!%p1244_p2), %s1179_s25, 4294966272  ;;  %p11_p3 = scmp.ge.s32.totalorder %s1386_s12, 4   ;;  %s2333_s6 = smov %s1337_s7 }
 0x1d9   : > { %s2334_s7 = smov %s1341_s8  ;;  %s2335_s8 = smov %s1397_s15 }
 0x1da   : > { %s2336_s9 = smov %s1386_s12  ;;  %13 = sbr.rel (!%p11_p3) target bundleno = 3 (0x3), region = 59 }
 0x1e1   :  { %1184 = vsyncpa [#allocation3], 1 }
 0x1e2   :  { %1186 = vsyncpa [#allocation3 + $0x1], 1 }

</bundles_post_ra>
